<compile_context>
chip_gen: v7x
topology: tpu7x:2x2x1
jax: 0.10.0
libtpu: 0.0.40
codegen_flags: <defaults>
</compile_context>

<pallas_src>
import functools
import math

import jax
import jax.numpy as jnp
from jax.experimental import pallas as pl
from jax.experimental.pallas import tpu as pltpu


# Per-generation scoped-VMEM budget.  Leave at the compiler default for the
# small-shape script; at production shapes set ~32-40 MiB on v7x (64 MiB total
# per TC) and up to ~96 MiB on v6e/v5e (128 MiB total).
_VMEM_LIMIT_BYTES = None


def _compiler_params(semantics):
    kwargs = dict(dimension_semantics=semantics)
    if _VMEM_LIMIT_BYTES is not None:
        kwargs["vmem_limit_bytes"] = _VMEM_LIMIT_BYTES
    return pltpu.CompilerParams(**kwargs)


def _pick_tile(dim, target, align):
    """Largest tile <= target that divides `dim` and is a multiple of `align`.

    Falls back to the full dimension (always a legal BlockSpec block).
    """
    if dim <= target:
        return dim
    t = (target // align) * align
    while t >= align:
        if dim % t == 0:
            return t
        t -= align
    return dim


def _round_up(x, m):
    return ((x + m - 1) // m) * m


# -----------------------------------------------------------------------------
# Pallas kernels
# -----------------------------------------------------------------------------
def _dense_kernel(x_ref, w_ref, b_ref, o_ref, *, activation):
    """Y = act(X @ W + b).  bf16 MXU operands, f32 accumulation.

    Used both weight-resident (grid over M, full K/N) and N-tiled for the
    vocab projection (grid over N, full M/K) — in both cases every block is a
    complete contraction, so no accumulator scratch is needed.
    """
    y = jnp.dot(x_ref[...], w_ref[...], preferred_element_type=jnp.float32)
    y = y + b_ref[...].astype(jnp.float32)
    if activation == "relu":
        y = jnp.maximum(y, 0.0)
    o_ref[...] = y.astype(o_ref.dtype)


def _dense_addln_kernel(x_ref, w_ref, b_ref, *rest, activation, eps,
                        has_residual):
    """Y = LayerNorm(act(X @ W + b) [+ residual]), weight-resident.

    Grid: (M/tm,).  N (the normalized axis) is one full-width block so the
    LayerNorm statistics cover the complete row.
    """
    if has_residual:
        res_ref, g_ref, beta_ref, o_ref = rest
    else:
        g_ref, beta_ref, o_ref = rest

    y = jnp.dot(x_ref[...], w_ref[...], preferred_element_type=jnp.float32)
    y = y + b_ref[...].astype(jnp.float32)
    if activation == "relu":
        y = jnp.maximum(y, 0.0)
    if has_residual:
        y = y + res_ref[...].astype(jnp.float32)
    mean = jnp.mean(y, axis=-1, keepdims=True)
    var = jnp.mean((y - mean) ** 2, axis=-1, keepdims=True)
    yn = (y - mean) * jax.lax.rsqrt(var + eps)
    o_ref[...] = (yn * g_ref[...] + beta_ref[...]).astype(o_ref.dtype)


def _attention_kernel(valid_ref, qkv_ref, o_ref, *, num_heads, head_dim):
    """Masked attention for one batch row, all heads per program.

    qkv_ref: [1, S, 3H] bf16 (packed Q|K|V, head-major columns inside each).
    o_ref:   [1, S, H]  bf16 — heads concatenated along the hidden axis, i.e.
             exactly the layout the output projection expects (no transpose).
    valid_ref: SMEM int32 [B]; masked logits set to -1e6 (d2l masked_softmax).
    """
    b = pl.program_id(0)
    qkv = qkv_ref[0]                                   # [S, 3H] bf16
    S = qkv.shape[0]
    H = num_heads * head_dim

    vl = valid_ref[b]
    key_idx = jax.lax.broadcasted_iota(jnp.int32, (S, S), 1)
    mask = key_idx < vl

    # Fold 1/sqrt(Dh) into q once (S*H multiplies) instead of scaling the
    # [S, S] score matrices (num_heads*S*S multiplies).
    scale = 1.0 / math.sqrt(head_dim)
    q_all = (qkv[:, :H].astype(jnp.float32) * scale).astype(jnp.bfloat16)

    outs = []
    for h in range(num_heads):                         # static unroll
        lo, hi = h * head_dim, (h + 1) * head_dim
        q = q_all[:, lo:hi]
        k = qkv[:, H + lo:H + hi]
        v = qkv[:, 2 * H + lo:2 * H + hi]

        scores = jax.lax.dot_general(                   # q @ k.T  -> [S, S]
            q, k, (((1,), (1,)), ((), ())),
            preferred_element_type=jnp.float32)
        scores = jnp.where(mask, scores, -1e6)

        m = jnp.max(scores, axis=-1, keepdims=True)
        e = jnp.exp(scores - m)
        denom = jnp.sum(e, axis=-1, keepdims=True)
        p = e * pl.reciprocal(denom, approx=True)       # EUP reciprocal

        outs.append(jnp.dot(p.astype(jnp.bfloat16), v,
                            preferred_element_type=jnp.float32))

    # Single lane-dense store of the head-concatenated block.
    o_ref[0] = jnp.concatenate(outs, axis=-1).astype(o_ref.dtype)
    # TODO(synk): at production S, switch to a flash-style KV-tiled online
    # softmax (and on v6e/v7x optionally compute exp in bf16).


# -----------------------------------------------------------------------------
# Pallas wrappers
# -----------------------------------------------------------------------------
def dense(x, w, b, activation=None, out_dtype=jnp.bfloat16, tm=512):
    """Weight-resident Y = act(x @ w + b).  x: [M, K] bf16, w: [K, N] bf16.

    Grid (M/tm,): the weight is DMA'd once and stays VMEM-resident while the
    activations stream.
    """
    M, K = x.shape
    N = w.shape[1]
    tm = _pick_tile(M, tm, 16)          # bf16 sublane packing
    grid = (M // tm,)

    kernel = functools.partial(_dense_kernel, activation=activation)
    return pl.pallas_call(
        kernel,
        out_shape=jax.ShapeDtypeStruct((M, N), out_dtype),
        grid_spec=pltpu.PrefetchScalarGridSpec(
            num_scalar_prefetch=0,
            grid=grid,
            in_specs=[
                pl.BlockSpec((tm, K), lambda i: (i, 0)),
                pl.BlockSpec((K, N), lambda i: (0, 0)),
                pl.BlockSpec((1, N), lambda i: (0, 0)),
            ],
            out_specs=pl.BlockSpec((tm, N), lambda i: (i, 0)),
        ),
        compiler_params=_compiler_params(("parallel",)),
    )(x, w, b.reshape(1, N))


def dense_vocab(x, w, b, out_dtype=jnp.float32, tn=512):
    """Vocab projection: small M, huge N.  Grid (N/tn,) with full M and K
    resident, so the ~vocab-sized weight streams from HBM exactly once."""
    M, K = x.shape
    N = w.shape[1]
    tn = _pick_tile(N, tn, 128)
    grid = (N // tn,)

    kernel = functools.partial(_dense_kernel, activation=None)
    return pl.pallas_call(
        kernel,
        out_shape=jax.ShapeDtypeStruct((M, N), out_dtype),
        grid_spec=pltpu.PrefetchScalarGridSpec(
            num_scalar_prefetch=0,
            grid=grid,
            in_specs=[
                pl.BlockSpec((M, K), lambda j: (0, 0)),
                pl.BlockSpec((K, tn), lambda j: (0, j)),
                pl.BlockSpec((1, tn), lambda j: (0, j)),
            ],
            out_specs=pl.BlockSpec((M, tn), lambda j: (0, j)),
        ),
        compiler_params=_compiler_params(("parallel",)),
    )(x, w, b.reshape(1, N))


def dense_add_layernorm(x, w, b, gamma, beta, residual=None, activation=None,
                        eps=1e-5, out_dtype=jnp.bfloat16, tm=512):
    """Weight-resident LayerNorm(act(x @ w + b) [+ residual])."""
    M, K = x.shape
    N = w.shape[1]
    tm = _pick_tile(M, tm, 16)
    grid = (M // tm,)
    has_residual = residual is not None

    kernel = functools.partial(_dense_addln_kernel, activation=activation,
                               eps=eps, has_residual=has_residual)

    in_specs = [
        pl.BlockSpec((tm, K), lambda i: (i, 0)),
        pl.BlockSpec((K, N), lambda i: (0, 0)),
        pl.BlockSpec((1, N), lambda i: (0, 0)),
    ]
    args = [x, w, b.reshape(1, N)]
    if has_residual:
        in_specs.append(pl.BlockSpec((tm, N), lambda i: (i, 0)))
        args.append(residual)
    in_specs += [
        pl.BlockSpec((1, N), lambda i: (0, 0)),
        pl.BlockSpec((1, N), lambda i: (0, 0)),
    ]
    args += [gamma.reshape(1, N), beta.reshape(1, N)]

    return pl.pallas_call(
        kernel,
        out_shape=jax.ShapeDtypeStruct((M, N), out_dtype),
        grid_spec=pltpu.PrefetchScalarGridSpec(
            num_scalar_prefetch=0,
            grid=grid,
            in_specs=in_specs,
            out_specs=pl.BlockSpec((tm, N), lambda i: (i, 0)),
        ),
        compiler_params=_compiler_params(("parallel",)),
    )(*args)


def masked_attention(qkv, valid_lens, num_heads):
    """qkv: [B, S, 3H] bf16 packed Q|K|V; valid_lens: [B] int32.
    Returns [B, S, H] bf16 with heads already concatenated (head-major)."""
    B, S, H3 = qkv.shape
    H = H3 // 3
    head_dim = H // num_heads

    kernel = functools.partial(_attention_kernel, num_heads=num_heads,
                               head_dim=head_dim)
    return pl.pallas_call(
        kernel,
        out_shape=jax.ShapeDtypeStruct((B, S, H), jnp.bfloat16),
        grid_spec=pltpu.PrefetchScalarGridSpec(
            num_scalar_prefetch=1,
            grid=(B,),
            in_specs=[pl.BlockSpec((1, S, H3), lambda b, vl: (b, 0, 0))],
            out_specs=pl.BlockSpec((1, S, H), lambda b, vl: (b, 0, 0)),
        ),
        compiler_params=_compiler_params(("parallel",)),
    )(valid_lens.astype(jnp.int32), qkv)


# -----------------------------------------------------------------------------
# Model glue (plain JAX gathers / contiguous reshapes around the Pallas calls)
# -----------------------------------------------------------------------------
def encoder_block(X2, valid_lens, p, num_heads, B, S):
    """X2: [B*S, H] bf16 row-major activations for one encoder block."""
    H = X2.shape[1]

    # Fused Q/K/V projection against the packed [H, 3H] weight.
    qkv = dense(X2, p["Wqkv"], p["bqkv"])                       # [B*S, 3H]

    # Attention consumes / produces the dense layout directly — no head
    # split/merge transposes (reshape below is metadata-only).
    attn = masked_attention(qkv.reshape(B, S, 3 * H), valid_lens, num_heads)
    attn = attn.reshape(B * S, H)

    # Output projection with residual + LayerNorm fused into the epilogue.
    Y = dense_add_layernorm(attn, p["Wo"], p["bo"], p["ln1_g"], p["ln1_b"],
                            residual=X2)

    # FFN: first matmul + ReLU; second matmul with residual + LN fused.
    ffn = dense(Y, p["ffn_W1"], p["ffn_b1"], activation="relu")
    Z = dense_add_layernorm(ffn, p["ffn_W2"], p["ffn_b2"],
                            p["ln2_g"], p["ln2_b"], residual=Y)
    return Z


def roberta_forward(tokens, valid_lens, pred_positions, params, num_heads,
                    vocab_size):
    B, S = tokens.shape
    H = params["token_emb"].shape[1]

    # Token + positional embedding (glue); activations live in bf16.
    X = jnp.take(params["token_emb"], tokens, axis=0)           # [B, S, H]
    X = X + params["pos_emb"][:, :S, :]
    X2 = X.reshape(B * S, H).astype(jnp.bfloat16)

    for p in params["layers"]:
        X2 = encoder_block(X2, valid_lens, p, num_heads, B, S)

    encoded_X = X2.reshape(B, S, H)

    # MaskLM head.
    num_pred = pred_positions.shape[1]
    batch_idx = jnp.repeat(jnp.arange(B), num_pred)
    flat_pos = pred_positions.reshape(-1)
    masked_X = encoded_X[batch_idx, flat_pos]                   # [B*num_pred, H]

    m = params["mlm"]
    # Linear -> ReLU -> LayerNorm fused into one kernel.
    h = dense_add_layernorm(masked_X, m["W1"], m["b1"], m["ln_g"], m["ln_b"],
                            activation="relu")
    # Vocab projection: N-tiled, padded-to-128 weight streams exactly once.
    logits = dense_vocab(h, m["W2"], m["b2"])[:, :vocab_size]
    mlm_y_hat = logits.reshape(B, num_pred, vocab_size)

    return encoded_X, mlm_y_hat


# -----------------------------------------------------------------------------
# Deterministic parameter construction (weights cast to bf16 once, here)
# -----------------------------------------------------------------------------
def init_params(key, vocab_size, num_hiddens, ffn_num_hiddens, num_heads,
                num_layers, max_len):
    keys = iter(jax.random.split(key, 8 + 16 * num_layers))

    def nrm(shape, scale=0.02):
        return (scale * jax.random.normal(next(keys), shape)).astype(jnp.float32)

    bf = lambda a: a.astype(jnp.bfloat16)

    params = {
        "token_emb": bf(nrm((vocab_size, num_hiddens), 1.0)),
        "pos_emb": bf(nrm((1, max_len, num_hiddens), 1.0)),
        "layers": [],
    }
    for _ in range(num_layers):
        p = {
            # Packed Q|K|V projection weights/biases: [H, 3H] / [3H].
            "Wqkv": bf(nrm((num_hiddens, 3 * num_hiddens))),
            "bqkv": jnp.zeros((3 * num_hiddens,), jnp.float32),
            "Wo": bf(nrm((num_hiddens, num_hiddens))),
            "bo": jnp.zeros((num_hiddens,), jnp.float32),
            "ln1_g": jnp.ones((num_hiddens,), jnp.float32),
            "ln1_b": jnp.zeros((num_hiddens,), jnp.float32),
            "ffn_W1": bf(nrm((num_hiddens, ffn_num_hiddens))),
            "ffn_b1": jnp.zeros((ffn_num_hiddens,), jnp.float32),
            "ffn_W2": bf(nrm((ffn_num_hiddens, num_hiddens))),
            "ffn_b2": jnp.zeros((num_hiddens,), jnp.float32),
            "ln2_g": jnp.ones((num_hiddens,), jnp.float32),
            "ln2_b": jnp.zeros((num_hiddens,), jnp.float32),
        }
        params["layers"].append(p)

    # Pad the vocab projection to a 128-multiple ONCE at init (one-time cost;
    # avoids a (K, vocab) full-width fallback tile at real ~50k vocabs).
    vocab_pad = _round_up(vocab_size, 128)
    W2 = nrm((num_hiddens, vocab_size))
    W2 = jnp.pad(W2, ((0, 0), (0, vocab_pad - vocab_size)))
    params["mlm"] = {
        "W1": bf(nrm((num_hiddens, num_hiddens))),
        "b1": jnp.zeros((num_hiddens,), jnp.float32),
        "ln_g": jnp.ones((num_hiddens,), jnp.float32),
        "ln_b": jnp.zeros((num_hiddens,), jnp.float32),
        "W2": bf(W2),
        "b2": jnp.zeros((vocab_pad,), jnp.float32),
    }
    return params


# -----------------------------------------------------------------------------
if __name__ == "__main__":
    # Small-shape configuration consistent with the module's constructor.
    vocab_size = 128
    num_hiddens = 32        # norm_shape = [32], key/query/value_size = 32
    ffn_num_hiddens = 64    # ffn_num_input = 32
    num_heads = 4
    num_layers = 2
    max_len = 16
    batch, seq, num_pred = 2, 8, 3
    # dropout = 0.0 (eval mode -> identity)

    key = jax.random.PRNGKey(0)
    k_tok, k_pos, k_param = jax.random.split(key, 3)

    tokens = jax.random.randint(k_tok, (batch, seq), 0, vocab_size, dtype=jnp.int32)
    valid_lens = jnp.array([seq, 5], dtype=jnp.int32)            # [B]
    pred_positions = jax.random.randint(k_pos, (batch, num_pred), 0, seq,
                                        dtype=jnp.int32)

    params = init_params(k_param, vocab_size, num_hiddens, ffn_num_hiddens,
                         num_heads, num_layers, max_len)

    encoded_X, mlm_y_hat = roberta_forward(tokens, valid_lens, pred_positions,
                                           params, num_heads, vocab_size)
    jax.block_until_ready((encoded_X, mlm_y_hat))

    assert encoded_X.shape == (batch, seq, num_hiddens)
    assert mlm_y_hat.shape == (batch, num_pred, vocab_size)
    print("KERNEL_OK")
</pallas_src>

<mosaic_0001>
module attributes {stable_mosaic.version = 11 : i64} {
  func.func @_dense_kernel(%arg0: i32, %arg1: memref<16x32xbf16, #tpu.memory_space<vmem>>, %arg2: memref<32x96xbf16, #tpu.memory_space<vmem>>, %arg3: memref<1x96xf32, #tpu.memory_space<vmem>>, %arg4: memref<16x96xbf16, #tpu.memory_space<vmem>>) attributes {dimension_semantics = [#tpu.dimension_semantics<parallel>], iteration_bounds = array<i64: 1>, scalar_prefetch = 0 : i64, scratch_operands = 0 : i64, tpu.core_type = #tpu.core_type<tc>, window_params = [{transform_indices = @transform_0, window_bounds = array<i64: 16, 32>}, {pipeline_mode = #tpu.pipeline_mode<synchronous>, transform_indices = @transform_1, window_bounds = array<i64: 32, 96>}, {pipeline_mode = #tpu.pipeline_mode<synchronous>, transform_indices = @transform_2, window_bounds = array<i64: 1, 96>}, {transform_indices = @transform_3, window_bounds = array<i64: 16, 96>}]} {
    %c0 = arith.constant 0 : index
    %c0_0 = arith.constant 0 : index
    %0 = vector.load %arg1[%c0, %c0_0] : memref<16x32xbf16, #tpu.memory_space<vmem>>, vector<16x32xbf16>
    %c0_1 = arith.constant 0 : index
    %c0_2 = arith.constant 0 : index
    %1 = vector.load %arg2[%c0_1, %c0_2] : memref<32x96xbf16, #tpu.memory_space<vmem>>, vector<32x96xbf16>
    %cst = arith.constant dense<0.000000e+00> : vector<16x96xf32>
    %2 = tpu.matmul %0, %1, %cst {dimension_numbers = #tpu.dot_dimension_numbers<[1], [0], [0], [1], [0, 0, 1, 1], [], []>} : vector<16x32xbf16>, vector<32x96xbf16>, vector<16x96xf32> -> vector<16x96xf32>
    %c0_3 = arith.constant 0 : index
    %c0_4 = arith.constant 0 : index
    %3 = vector.load %arg3[%c0_3, %c0_4] : memref<1x96xf32, #tpu.memory_space<vmem>>, vector<1x96xf32>
    %4 = vector.broadcast %3 : vector<1x96xf32> to vector<16x96xf32>
    %5 = arith.addf %2, %4 : vector<16x96xf32>
    %6 = arith.truncf %5 : vector<16x96xf32> to vector<16x96xbf16>
    %c0_5 = arith.constant 0 : index
    %c0_6 = arith.constant 0 : index
    %7 = vector.load %arg4[%c0_5, %c0_6] : memref<16x96xbf16, #tpu.memory_space<vmem>>, vector<16x96xbf16>
    tpu.vector_store %arg4[%c0_5, %c0_6], %6 {strides = array<i32>} : memref<16x96xbf16, #tpu.memory_space<vmem>>, vector<16x96xbf16>,
    return
  }
  func.func @transform_0(%arg0: i32) -> (i32, i32) {
    %c0_i32 = arith.constant 0 : i32
    %c0_i32_0 = arith.constant 0 : i32
    return %arg0, %c0_i32 : i32, i32
  }
  func.func @transform_1(%arg0: i32) -> (i32, i32) {
    %c0_i32 = arith.constant 0 : i32
    %c0_i32_0 = arith.constant 0 : i32
    %c0_i32_1 = arith.constant 0 : i32
    return %c0_i32, %c0_i32_0 : i32, i32
  }
  func.func @transform_2(%arg0: i32) -> (i32, i32) {
    %c0_i32 = arith.constant 0 : i32
    %c0_i32_0 = arith.constant 0 : i32
    %c0_i32_1 = arith.constant 0 : i32
    return %c0_i32, %c0_i32_0 : i32, i32
  }
  func.func @transform_3(%arg0: i32) -> (i32, i32) {
    %c0_i32 = arith.constant 0 : i32
    %c0_i32_0 = arith.constant 0 : i32
    return %arg0, %c0_i32 : i32, i32
  }
}

</mosaic_0001>

<bundles_post_ra>
// kernel: tpu_custom_call.1
= control target key start
LH: loop header
LB: loop body
LE: loop exit
PB: predicated region body
PF: predicated region fallthrough
CT: control target
= control target key end

     0   :  { %8 = vsyncpa [#allocation3], 0  ;;  %s325_s0 = inlined_call_operand.hbm [shape: bf16[16,32], index: 0, kind: input, shape index: {}]   ;;  %s326_s1 = inlined_call_operand.hbm [shape: bf16[32,96], index: 1, kind: input, shape index: {}]   ;;  %s327_s2 = inlined_call_operand.vmem [shape: f32[1,96], index: 2, kind: input, shape index: {}]   ;;  %s328_s3 = inlined_call_operand.hbm [shape: bf16[16,96], index: 3, kind: output, shape index: {}]  }
   0x1   :  { %9 = vsyncpa [#allocation6], 0 }
   0x2   :  { %10 = vsyncpa [#allocation4], 0  ;;  %s250_s12 = smov [#allocation2]   ;;  %s178_s16 = scalar_lea.hbm %s325_s0, 128 }
   0x3   :  { %s16_s13 = sshll.u32 %s250_s12, 4  ;;  %p179_p0 = scmp.ne.s32.totalorder %s325_s0, %s178_s16  ;;  %s17_s13 = int_to_ptr.vmem [resolvable:$true] %s16_s13 }
   0x4   :  { %p182_p1 = scmp.lt.u32.totalorder %s178_s16, %s325_s0 }
   0x6   :  { %p184_p2 = pnand %p182_p1, %p179_p0 }
   0x8   :  { %187 = shalt.err (!%p184_p2)
}
   0x9   :  { %s188_s21 = scalar_lea.vmem %s17_s13, 128  ;;  %p193_p4 = scmp.lt.s32.totalorder %s17_s13, %s17_s13 }
   0xa   :  { %p189_p3 = scmp.ne.s32.totalorder %s17_s13, %s188_s21  ;;  %p194_p5 = scmp.lt.s32.totalorder %s188_s21, %s188_s21 }
   0xc   :  { %p195_p6 = por %p194_p5, %p193_p4 }
   0xe   :  { %p196_p7 = pnand %p195_p6, %p189_p3 }
  0x10   :  { %199 = shalt.err (!%p196_p7)
}
  0x11   :  { %s251_s22 = smov 64   ;;  %s252_s23 = smov 4  }
  0x12   :  { %22 = dma.hbm_to_vmem [thread:$0]  %s325_s0, 128, %s17_s13, [#allocation3], %s251_s22, %s251_s22, %s252_s23  }
  0x13   :  { %s253_s26 = smov [#allocation5]   ;;  %s200_s30 = scalar_lea.hbm %s326_s1, 256 }
  0x14   :  { %s28_s27 = sshll.u32 %s253_s26, 4  ;;  %p201_p8 = scmp.ne.s32.totalorder %s326_s1, %s200_s30  ;;  %s29_s27 = int_to_ptr.vmem [resolvable:$true] %s28_s27 }
  0x15   :  { %p204_p9 = scmp.lt.u32.totalorder %s200_s30, %s326_s1 }
  0x17   :  { %p206_p10 = pnand %p204_p9, %p201_p8 }
  0x19   :  { %209 = shalt.err (!%p206_p10)
}
  0x1a   :  { %s210_s8 = scalar_lea.vmem %s29_s27, 256  ;;  %p215_p12 = scmp.lt.s32.totalorder %s29_s27, %s29_s27 }
  0x1b   :  { %p211_p11 = scmp.ne.s32.totalorder %s29_s27, %s210_s8  ;;  %p216_p13 = scmp.lt.s32.totalorder %s210_s8, %s210_s8 }
  0x1d   :  { %p217_p0 = por %p216_p13, %p215_p12 }
  0x1f   :  { %p218_p1 = pnand %p217_p0, %p211_p11 }
  0x21   :  { %221 = shalt.err (!%p218_p1)
}
  0x22   :  { %34 = dma.hbm_to_vmem [thread:$0]  %s326_s1, 256, %s29_s27, [#allocation6], %s251_s22, %s251_s22, %s252_s23  }
  0x23   :  { %244 = dma.done.wait [#allocation3], 128  }
  0x24   :  { %245 = vsyncadd [#allocation3], 4294967168 }
  0x25   :  { %246 = dma.done.wait [#allocation6], 256  }
  0x26   :  { %247 = vsyncadd [#allocation6], 4294967040  ;;  %v254_v0 = vmov 0.0   ;;  %vm255_vm0 = vmmov 0   ;;  %v175_v1 = vld [vmem:[#allocation5] sm:$0xff]   ;;  %v176_v2 = vld [vmem:[#allocation5 + $0x8] sm:$0xff]  }
  0x27   :  { %160 = vmatprep.subr.bf16.mxu0 %v254_v0  ;;  %164 = vmatprep.mubr.msk.bf16.mxu0 %vm255_vm0, %v254_v0  ;;  %v177_v3 = vld [vmem:[#allocation2] sm:$0xff]   ;;  %vm74_vm1 = vcmask 261120   ;;  %vm127_vm2 = vcmask 781312   ;;  %s256_s1 = smov [#allocation7]  }
  0x28   :  { %161 = vmatpush3.bf16.msra.mxu0 %v175_v1  ;;  %v148_v4 = vld [vmem:[%s327_s2] ss:$0 sm:$0xff]  ;;  %s135_s12 = sshll.u32 %s256_s1, 4  ;;  %s136_s12 = int_to_ptr.vmem [resolvable:$true] %s135_s12 }
  0x29   :  { %162 = vmatprep.subr.bf16.mxu0 %v254_v0  ;;  %s222_s13 = scalar_lea.vmem %s136_s12, 128  ;;  %p227_p3 = scmp.lt.s32.totalorder %s136_s12, %s136_s12 }
  0x2a   :  { %p223_p2 = scmp.ne.s32.totalorder %s136_s12, %s222_s13  ;;  %p228_p4 = scmp.lt.s32.totalorder %s222_s13, %s222_s13 }
  0x2c   :  { %163 = vmatpush3.bf16.msra.mxu0 %v176_v2  ;;  %p229_p5 = por %p228_p4, %p227_p3 }
  0x2e   :  { %p230_p6 = pnand %p229_p5, %p223_p2 }
  0x2f   :  { %165 = vmatmul.mubr.msk.bf16.vlgmr.msra.gmra.mrb[0].mxu0 %vm74_vm1, %v177_v3 }
 0x102   :  { %v112_v5 = vpop.f32.mrb[0].mxu0 }
 0x103   :  { %v113_v6 = vadd.f32 %v148_v4, %v112_v5  ;;  %v166_v7 = vpop.f32.mrb[1].mxu0 }
 0x104   :  { %v115_v8 = vpop.f32.mrb[2].mxu0 }
 0x105   :  { %v155_v9 = vpack.c.bf16 %v113_v6, %v113_v6  ;;  %v116_v10 = vadd.f32 %v148_v4, %v115_v8  ;;  %v167_v11 = vpop.f32.mrb[3].mxu0 }
 0x107   :  { %v156_v12 = vpack.c.bf16 %v116_v10, %v116_v10  ;;  %128 = vst.msk [vmem:[#allocation7] sm:$0xf] %vm127_vm2, %v155_v9 }
 0x109   :  { %129 = vst.msk [vmem:[#allocation7 + $0x4] sm:$0xf] %vm127_vm2, %v156_v12 }
 0x10a   :  { %233 = shalt.err (!%p230_p6)
}
 0x10b   :  { %s234_s15 = scalar_lea.hbm %s328_s3, 128 }
 0x10c   :  { %p235_p7 = scmp.ne.s32.totalorder %s328_s3, %s234_s15  ;;  %p238_p8 = scmp.lt.u32.totalorder %s234_s15, %s328_s3 }
 0x10e   :  { %p240_p9 = pnand %p238_p8, %p235_p7 }
 0x110   :  { %243 = shalt.err (!%p240_p9)
}
 0x111   :  { %141 = dma.vmem_to_hbm [thread:$0]  %s136_s12, 128, %s328_s3, [#allocation4], %s251_s22, %s251_s22, %s252_s23  }
 0x112   :  { %248 = dma.done.wait [#allocation4], 128  }
 0x113   :  { %249 = vsyncadd [#allocation4], 4294967168 }
 0x114   :  { %145 = vsyncpa [#allocation3], 1 }
 0x115   :  { %146 = vsyncpa [#allocation6], 1 }
 0x116   :  { %147 = vsyncpa [#allocation4], 1 }

</bundles_post_ra>
